<compile_context>
chip_gen: v6e
topology: v6e:2x2x1
jax: 0.10.0
libtpu: 0.0.40
codegen_flags: <defaults>
</compile_context>

<pallas_src>
import functools

import jax
import jax.numpy as jnp
from jax.experimental import pallas as pl
from jax.experimental.pallas import tpu as pltpu

_LANE = 128


# ------------------------------ fused kernel --------------------------------

def _fused_appnp_kernel(x_ref, w_in_ref, b_in_ref, a_ref, gamma_ref, beta_ref,
                        w_out_ref, b_out_ref, o_ref, h_ref, h0_ref,
                        *, alpha, eps):
    layer = pl.program_id(0)
    last = pl.num_programs(0) - 1

    # ---- input linear + ReLU (first grid step); h, alpha*h0 -> bf16 VMEM ----
    @pl.when(layer == 0)
    def _():
        h = jnp.dot(x_ref[...], w_in_ref[...],
                    preferred_element_type=jnp.float32)
        h = jnp.maximum(h + b_in_ref[...], 0.0)
        h_ref[...] = h.astype(jnp.bfloat16)
        h0_ref[...] = (alpha * h).astype(jnp.bfloat16)   # alpha folded once

    # ---- APPNP propagation: (1-alpha) already folded into a_ref on host ----
    prop = jnp.dot(a_ref[...], h_ref[...],
                   preferred_element_type=jnp.float32)
    prop = prop + h0_ref[...].astype(jnp.float32)

    # ---- BatchNorm1d: one-pass stats, fused scale/shift (f32 math) ----
    inv_n = 1.0 / prop.shape[0]
    mean = jnp.sum(prop, axis=0, keepdims=True) * inv_n
    mean_sq = jnp.sum(prop * prop, axis=0, keepdims=True) * inv_n
    var = mean_sq - mean * mean
    scale = gamma_ref[layer] * jax.lax.rsqrt(var + eps)     # [1,H]
    shift = beta_ref[layer] - mean * scale                  # [1,H]
    h_ref[...] = (prop * scale + shift).astype(jnp.bfloat16)

    # ---- output linear (last grid step only), lane-dense padded output ----
    @pl.when(layer == last)
    def _():
        y = jnp.dot(h_ref[...], w_out_ref[...],
                    preferred_element_type=jnp.float32)
        o_ref[...] = (y + b_out_ref[...]).astype(o_ref.dtype)


# ------------------------------ model wrapper --------------------------------

def appnp_ogb_forward(params, a_hat, x, *, alpha=0.1, eps=1e-5):
    n, f_dim = x.shape
    hdim = params["w_in"].shape[1]
    num_classes = params["w_out"].shape[1]
    num_layers = len(params["bn_gamma"])
    assert num_layers >= 1, "num_layers == 0 path not implemented"

    out_dtype = x.dtype
    c_pad = ((num_classes + _LANE - 1) // _LANE) * _LANE

    # ---------------- host-side one-time prep (folded / packed / bf16) --------
    x_bf = x.astype(jnp.bfloat16)                                      # [N,F]
    a_bf = ((1.0 - alpha) * a_hat).astype(jnp.bfloat16)                # [N,N]
    gamma = jnp.stack(params["bn_gamma"]).astype(jnp.float32)          # [L,1,H]
    beta = jnp.stack(params["bn_beta"]).astype(jnp.float32)            # [L,1,H]
    w_in = params["w_in"].astype(jnp.bfloat16)                         # [F,H]
    b_in = params["b_in"].astype(jnp.float32)                          # [1,H]
    w_out = jnp.zeros((hdim, c_pad), jnp.bfloat16).at[:, :num_classes].set(
        params["w_out"].astype(jnp.bfloat16))                          # [H,Cp]
    b_out = jnp.zeros((1, c_pad), jnp.float32).at[:, :num_classes].set(
        params["b_out"].astype(jnp.float32))                           # [1,Cp]

    # ---------------- generation-aware VMEM budget + cost estimate -------------
    vmem_bytes = (
        2 * n * f_dim * 2                # x (bf16), worst-case double-buffered
        + 2 * f_dim * hdim * 2           # w_in (bf16)
        + 2 * hdim * 4                   # b_in
        + 2 * n * n * 2                  # A_hat (bf16, constant index)
        + 2 * 2 * num_layers * hdim * 4  # gamma, beta (resident)
        + 2 * hdim * c_pad * 2           # w_out (bf16)
        + 2 * c_pad * 4                  # b_out
        + 2 * n * c_pad * 4              # output block
        + 2 * n * hdim * 2               # h, h0 scratch (bf16)
    )
    try:
        phys_vmem = int(pltpu.get_tpu_info().vmem_capacity_bytes)
    except Exception:  # pragma: no cover - conservative fallback
        phys_vmem = 64 << 20
    vmem_limit = int(min(max(vmem_bytes + (4 << 20), 16 << 20),
                         phys_vmem - (2 << 20)))

    flops = int(2 * n * f_dim * hdim
                + num_layers * (2 * n * n * hdim + 8 * n * hdim)
                + 2 * n * hdim * c_pad)
    bytes_accessed = int(
        x_bf.size * 2 + a_bf.size * 2 + w_in.size * 2 + w_out.size * 2
        + (b_in.size + b_out.size + gamma.size + beta.size) * 4
        + n * c_pad * 4)
    cost = pl.CostEstimate(flops=flops,
                           transcendentals=int(num_layers * hdim),
                           bytes_accessed=bytes_accessed)

    # ---------------- single fused pallas_call (grid = layer loop) -------------
    out_padded = pl.pallas_call(
        functools.partial(_fused_appnp_kernel, alpha=alpha, eps=eps),
        out_shape=jax.ShapeDtypeStruct((n, c_pad), out_dtype),
        grid_spec=pltpu.PrefetchScalarGridSpec(
            num_scalar_prefetch=0,
            grid=(num_layers,),
            in_specs=[
                pl.BlockSpec((n, f_dim), lambda l: (0, 0)),            # x
                pl.BlockSpec((f_dim, hdim), lambda l: (0, 0)),         # w_in
                pl.BlockSpec((1, hdim), lambda l: (0, 0)),             # b_in
                pl.BlockSpec((n, n), lambda l: (0, 0)),                # A_hat
                pl.BlockSpec((num_layers, 1, hdim),
                             lambda l: (0, 0, 0)),                     # gamma
                pl.BlockSpec((num_layers, 1, hdim),
                             lambda l: (0, 0, 0)),                     # beta
                pl.BlockSpec((hdim, c_pad), lambda l: (0, 0)),         # w_out
                pl.BlockSpec((1, c_pad), lambda l: (0, 0)),            # b_out
            ],
            out_specs=pl.BlockSpec((n, c_pad), lambda l: (0, 0)),
            scratch_shapes=[
                pltpu.VMEM((n, hdim), jnp.bfloat16),                   # h
                pltpu.VMEM((n, hdim), jnp.bfloat16),                   # alpha*h0
            ],
        ),
        compiler_params=pltpu.CompilerParams(
            dimension_semantics=("arbitrary",),   # layer axis is sequential
            vmem_limit_bytes=vmem_limit,
        ),
        cost_estimate=cost,
    )(x_bf, w_in, b_in, a_bf, gamma, beta, w_out, b_out)

    return out_padded[:, :num_classes]


# ------------------------------ pure-JAX reference ---------------------------

def _reference_forward(params, a_hat, x, *, alpha=0.1, eps=1e-5):
    h = jnp.maximum(x @ params["w_in"] + params["b_in"], 0.0)
    h0 = h
    for l in range(len(params["bn_gamma"])):
        h = (1.0 - alpha) * (a_hat @ h) + alpha * h0
        mean = jnp.mean(h, axis=0, keepdims=True)
        var = jnp.mean((h - mean) ** 2, axis=0, keepdims=True)
        h = (params["bn_gamma"][l] * (h - mean) * jax.lax.rsqrt(var + eps)
             + params["bn_beta"][l])
    return h @ params["w_out"] + params["b_out"]


# ------------------------------ params / data --------------------------------

def init_params(key, features_dim, hidden_dim, num_classes, num_layers,
                dtype=jnp.float32):
    ks = jax.random.split(key, 4)
    # PyTorch nn.Linear default init: U(-1/sqrt(fan_in), 1/sqrt(fan_in))
    lim_in = 1.0 / jnp.sqrt(features_dim)
    lim_out = 1.0 / jnp.sqrt(hidden_dim)
    return {
        "w_in": jax.random.uniform(ks[0], (features_dim, hidden_dim),
                                   dtype, -lim_in, lim_in),
        "b_in": jax.random.uniform(ks[1], (1, hidden_dim),
                                   dtype, -lim_in, lim_in),
        "w_out": jax.random.uniform(ks[2], (hidden_dim, num_classes),
                                    dtype, -lim_out, lim_out),
        "b_out": jax.random.uniform(ks[3], (1, num_classes),
                                    dtype, -lim_out, lim_out),
        "bn_gamma": [jnp.ones((1, hidden_dim), dtype) for _ in range(num_layers)],
        "bn_beta": [jnp.zeros((1, hidden_dim), dtype) for _ in range(num_layers)],
    }


def make_normalized_adjacency(key, n, dtype=jnp.float32):
    """Dense symmetric random graph -> D^-1/2 (A + I) D^-1/2."""
    r = jax.random.uniform(key, (n, n))
    adj = (r + r.T > 1.4).astype(dtype)          # symmetric sparse-ish graph
    adj = adj + jnp.eye(n, dtype=dtype)          # self loops
    deg = jnp.sum(adj, axis=1)
    d_inv_sqrt = 1.0 / jnp.sqrt(deg)
    return (adj * d_inv_sqrt[:, None]) * d_inv_sqrt[None, :]


# ----------------------------------- main ------------------------------------

if __name__ == "__main__":
    N = 128            # number of nodes
    FEATURES = 64
    HIDDEN = 128
    NUM_CLASSES = 32
    NUM_LAYERS = 2
    ALPHA = 0.1

    root = jax.random.PRNGKey(0)
    k_x, k_p, k_a = jax.random.split(root, 3)

    x = jax.random.normal(k_x, (N, FEATURES), jnp.float32)
    params = init_params(k_p, FEATURES, HIDDEN, NUM_CLASSES, NUM_LAYERS)
    a_hat = make_normalized_adjacency(k_a, N)    # single layer-invariant A_hat

    out = appnp_ogb_forward(params, a_hat, x, alpha=ALPHA)
    out = jax.block_until_ready(out)

    assert out.shape == (N, NUM_CLASSES), out.shape
    assert jnp.all(jnp.isfinite(out))

    # bf16 operands + bf16-resident h/h0 vs. f32 reference: generous tolerance.
    ref = _reference_forward(params, a_hat, x, alpha=ALPHA)
    max_err = float(jnp.max(jnp.abs(out.astype(jnp.float32) - ref)))
    assert max_err < 0.15, f"max abs error vs f32 reference too large: {max_err}"

    print("KERNEL_OK")
</pallas_src>

<mosaic_0001>
module attributes {stable_mosaic.version = 11 : i64} {
  func.func @_fused_appnp_kernel(%arg0: i32, %arg1: memref<128x64xbf16, #tpu.memory_space<vmem>>, %arg2: memref<64x128xbf16, #tpu.memory_space<vmem>>, %arg3: memref<1x128xf32, #tpu.memory_space<vmem>>, %arg4: memref<128x128xbf16, #tpu.memory_space<vmem>>, %arg5: memref<2x1x128xf32, #tpu.memory_space<vmem>>, %arg6: memref<2x1x128xf32, #tpu.memory_space<vmem>>, %arg7: memref<128x128xbf16, #tpu.memory_space<vmem>>, %arg8: memref<1x128xf32, #tpu.memory_space<vmem>>, %arg9: memref<128x128xf32, #tpu.memory_space<vmem>>, %arg10: memref<128x128xbf16, #tpu.memory_space<vmem>>, %arg11: memref<128x128xbf16, #tpu.memory_space<vmem>>) attributes {dimension_semantics = [#tpu.dimension_semantics<arbitrary>], iteration_bounds = array<i64: 2>, scalar_prefetch = 0 : i64, scratch_operands = 2 : i64, tpu.core_type = #tpu.core_type<tc>, window_params = [{pipeline_mode = #tpu.pipeline_mode<synchronous>, transform_indices = @transform_0, window_bounds = array<i64: 128, 64>}, {pipeline_mode = #tpu.pipeline_mode<synchronous>, transform_indices = @transform_1, window_bounds = array<i64: 64, 128>}, {pipeline_mode = #tpu.pipeline_mode<synchronous>, transform_indices = @transform_2, window_bounds = array<i64: 1, 128>}, {pipeline_mode = #tpu.pipeline_mode<synchronous>, transform_indices = @transform_3, window_bounds = array<i64: 128, 128>}, {pipeline_mode = #tpu.pipeline_mode<synchronous>, transform_indices = @transform_4, window_bounds = array<i64: 2, 1, 128>}, {pipeline_mode = #tpu.pipeline_mode<synchronous>, transform_indices = @transform_5, window_bounds = array<i64: 2, 1, 128>}, {pipeline_mode = #tpu.pipeline_mode<synchronous>, transform_indices = @transform_6, window_bounds = array<i64: 128, 128>}, {pipeline_mode = #tpu.pipeline_mode<synchronous>, transform_indices = @transform_7, window_bounds = array<i64: 1, 128>}, {pipeline_mode = #tpu.pipeline_mode<synchronous>, transform_indices = @transform_8, window_bounds = array<i64: 128, 128>}]} {
    %c0_i32 = arith.constant 0 : i32
    %0 = arith.cmpi eq, %arg0, %c0_i32 : i32
    %1 = arith.extui %0 : i1 to i32
    %c0_i32_0 = arith.constant 0 : i32
    %2 = arith.cmpi ne, %1, %c0_i32_0 : i32
    scf.if %2 {
      %c0_18 = arith.constant 0 : index
      %c0_19 = arith.constant 0 : index
      %41 = vector.load %arg1[%c0_18, %c0_19] : memref<128x64xbf16, #tpu.memory_space<vmem>>, vector<128x64xbf16>
      %c0_20 = arith.constant 0 : index
      %c0_21 = arith.constant 0 : index
      %42 = vector.load %arg2[%c0_20, %c0_21] : memref<64x128xbf16, #tpu.memory_space<vmem>>, vector<64x128xbf16>
      %cst_22 = arith.constant dense<0.000000e+00> : vector<128x128xf32>
      %43 = tpu.matmul %41, %42, %cst_22 {dimension_numbers = #tpu.dot_dimension_numbers<[1], [0], [0], [1], [0, 0, 1, 1], [], []>} : vector<128x64xbf16>, vector<64x128xbf16>, vector<128x128xf32> -> vector<128x128xf32>
      %c0_23 = arith.constant 0 : index
      %c0_24 = arith.constant 0 : index
      %44 = vector.load %arg3[%c0_23, %c0_24] : memref<1x128xf32, #tpu.memory_space<vmem>>, vector<1x128xf32>
      %45 = vector.broadcast %44 : vector<1x128xf32> to vector<128x128xf32>
      %46 = arith.addf %43, %45 : vector<128x128xf32>
      %cst_25 = arith.constant 0.000000e+00 : f32
      %47 = vector.broadcast %cst_25 : f32 to vector<128x128xf32>
      %48 = arith.maximumf %46, %47 : vector<128x128xf32>
      %49 = arith.truncf %48 : vector<128x128xf32> to vector<128x128xbf16>
      %c0_26 = arith.constant 0 : index
      %c0_27 = arith.constant 0 : index
      %50 = vector.load %arg10[%c0_26, %c0_27] : memref<128x128xbf16, #tpu.memory_space<vmem>>, vector<128x128xbf16>
      tpu.vector_store %arg10[%c0_26, %c0_27], %49 {strides = array<i32>} : memref<128x128xbf16, #tpu.memory_space<vmem>>, vector<128x128xbf16>,
      %cst_28 = arith.constant 1.000000e-01 : f32
      %51 = vector.broadcast %cst_28 : f32 to vector<128x128xf32>
      %52 = arith.mulf %51, %48 : vector<128x128xf32>
      %53 = arith.truncf %52 : vector<128x128xf32> to vector<128x128xbf16>
      %c0_29 = arith.constant 0 : index
      %c0_30 = arith.constant 0 : index
      %54 = vector.load %arg11[%c0_29, %c0_30] : memref<128x128xbf16, #tpu.memory_space<vmem>>, vector<128x128xbf16>
      tpu.vector_store %arg11[%c0_29, %c0_30], %53 {strides = array<i32>} : memref<128x128xbf16, #tpu.memory_space<vmem>>, vector<128x128xbf16>,
    } else {
    }
    %c0 = arith.constant 0 : index
    %c0_1 = arith.constant 0 : index
    %3 = vector.load %arg4[%c0, %c0_1] : memref<128x128xbf16, #tpu.memory_space<vmem>>, vector<128x128xbf16>
    %c0_2 = arith.constant 0 : index
    %c0_3 = arith.constant 0 : index
    %4 = vector.load %arg10[%c0_2, %c0_3] : memref<128x128xbf16, #tpu.memory_space<vmem>>, vector<128x128xbf16>
    %cst = arith.constant dense<0.000000e+00> : vector<128x128xf32>
    %5 = tpu.matmul %3, %4, %cst {dimension_numbers = #tpu.dot_dimension_numbers<[1], [0], [0], [1], [0, 0, 1, 1], [], []>} : vector<128x128xbf16>, vector<128x128xbf16>, vector<128x128xf32> -> vector<128x128xf32>
    %c0_4 = arith.constant 0 : index
    %c0_5 = arith.constant 0 : index
    %6 = vector.load %arg11[%c0_4, %c0_5] : memref<128x128xbf16, #tpu.memory_space<vmem>>, vector<128x128xbf16>
    %7 = arith.extf %6 : vector<128x128xbf16> to vector<128x128xf32>
    %8 = arith.addf %5, %7 : vector<128x128xf32>
    %cst_6 = arith.constant dense<0.000000e+00> : vector<128xf32>
    %9 = vector.multi_reduction <add>, %8, %cst_6 [0] : vector<128x128xf32> to vector<128xf32>
    %10 = vector.shape_cast %9 : vector<128xf32> to vector<1x128xf32>
    %cst_7 = arith.constant 7.812500e-03 : f32
    %11 = vector.broadcast %cst_7 : f32 to vector<1x128xf32>
    %12 = arith.mulf %10, %11 : vector<1x128xf32>
    %13 = arith.mulf %8, %8 : vector<128x128xf32>
    %cst_8 = arith.constant dense<0.000000e+00> : vector<128xf32>
    %14 = vector.multi_reduction <add>, %13, %cst_8 [0] : vector<128x128xf32> to vector<128xf32>
    %15 = vector.shape_cast %14 : vector<128xf32> to vector<1x128xf32>
    %cst_9 = arith.constant 7.812500e-03 : f32
    %16 = vector.broadcast %cst_9 : f32 to vector<1x128xf32>
    %17 = arith.mulf %15, %16 : vector<1x128xf32>
    %18 = arith.mulf %12, %12 : vector<1x128xf32>
    %19 = arith.subf %17, %18 : vector<1x128xf32>
    %20 = arith.index_cast %arg0 : i32 to index
    %c0_10 = arith.constant 0 : index
    %c0_11 = arith.constant 0 : index
    %21 = vector.load %arg5[%20, %c0_10, %c0_11] : memref<2x1x128xf32, #tpu.memory_space<vmem>>, vector<1x1x128xf32>
    %22 = vector.shape_cast %21 : vector<1x1x128xf32> to vector<1x128xf32>
    %cst_12 = arith.constant 9.99999974E-6 : f32
    %23 = vector.broadcast %cst_12 : f32 to vector<1x128xf32>
    %24 = arith.addf %19, %23 : vector<1x128xf32>
    %25 = math.rsqrt %24 : vector<1x128xf32>
    %26 = arith.mulf %22, %25 : vector<1x128xf32>
    %27 = arith.index_cast %arg0 : i32 to index
    %c0_13 = arith.constant 0 : index
    %c0_14 = arith.constant 0 : index
    %28 = vector.load %arg6[%27, %c0_13, %c0_14] : memref<2x1x128xf32, #tpu.memory_space<vmem>>, vector<1x1x128xf32>
    %29 = vector.shape_cast %28 : vector<1x1x128xf32> to vector<1x128xf32>
    %30 = arith.mulf %12, %26 : vector<1x128xf32>
    %31 = arith.subf %29, %30 : vector<1x128xf32>
    %32 = vector.broadcast %26 : vector<1x128xf32> to vector<128x128xf32>
    %33 = arith.mulf %8, %32 : vector<128x128xf32>
    %34 = vector.broadcast %31 : vector<1x128xf32> to vector<128x128xf32>
    %35 = arith.addf %33, %34 : vector<128x128xf32>
    %36 = arith.truncf %35 : vector<128x128xf32> to vector<128x128xbf16>
    %c0_15 = arith.constant 0 : index
    %c0_16 = arith.constant 0 : index
    %37 = vector.load %arg10[%c0_15, %c0_16] : memref<128x128xbf16, #tpu.memory_space<vmem>>, vector<128x128xbf16>
    tpu.vector_store %arg10[%c0_15, %c0_16], %36 {strides = array<i32>} : memref<128x128xbf16, #tpu.memory_space<vmem>>, vector<128x128xbf16>,
    %c1_i32 = arith.constant 1 : i32
    %38 = arith.cmpi eq, %arg0, %c1_i32 : i32
    %39 = arith.extui %38 : i1 to i32
    %c0_i32_17 = arith.constant 0 : i32
    %40 = arith.cmpi ne, %39, %c0_i32_17 : i32
    scf.if %40 {
      %c0_18 = arith.constant 0 : index
      %c0_19 = arith.constant 0 : index
      %41 = vector.load %arg10[%c0_18, %c0_19] : memref<128x128xbf16, #tpu.memory_space<vmem>>, vector<128x128xbf16>
      %c0_20 = arith.constant 0 : index
      %c0_21 = arith.constant 0 : index
      %42 = vector.load %arg7[%c0_20, %c0_21] : memref<128x128xbf16, #tpu.memory_space<vmem>>, vector<128x128xbf16>
      %cst_22 = arith.constant dense<0.000000e+00> : vector<128x128xf32>
      %43 = tpu.matmul %41, %42, %cst_22 {dimension_numbers = #tpu.dot_dimension_numbers<[1], [0], [0], [1], [0, 0, 1, 1], [], []>} : vector<128x128xbf16>, vector<128x128xbf16>, vector<128x128xf32> -> vector<128x128xf32>
      %c0_23 = arith.constant 0 : index
      %c0_24 = arith.constant 0 : index
      %44 = vector.load %arg8[%c0_23, %c0_24] : memref<1x128xf32, #tpu.memory_space<vmem>>, vector<1x128xf32>
      %45 = vector.broadcast %44 : vector<1x128xf32> to vector<128x128xf32>
      %46 = arith.addf %43, %45 : vector<128x128xf32>
      %c0_25 = arith.constant 0 : index
      %c0_26 = arith.constant 0 : index
      %47 = vector.load %arg9[%c0_25, %c0_26] : memref<128x128xf32, #tpu.memory_space<vmem>>, vector<128x128xf32>
      tpu.vector_store %arg9[%c0_25, %c0_26], %46 {strides = array<i32>} : memref<128x128xf32, #tpu.memory_space<vmem>>, vector<128x128xf32>,
    } else {
    }
    return
  }
  func.func @transform_0(%arg0: i32) -> (i32, i32) {
    %c0_i32 = arith.constant 0 : i32
    %c0_i32_0 = arith.constant 0 : i32
    %c0_i32_1 = arith.constant 0 : i32
    return %c0_i32, %c0_i32_0 : i32, i32
  }
  func.func @transform_1(%arg0: i32) -> (i32, i32) {
    %c0_i32 = arith.constant 0 : i32
    %c0_i32_0 = arith.constant 0 : i32
    %c0_i32_1 = arith.constant 0 : i32
    return %c0_i32, %c0_i32_0 : i32, i32
  }
  func.func @transform_2(%arg0: i32) -> (i32, i32) {
    %c0_i32 = arith.constant 0 : i32
    %c0_i32_0 = arith.constant 0 : i32
    %c0_i32_1 = arith.constant 0 : i32
    return %c0_i32, %c0_i32_0 : i32, i32
  }
  func.func @transform_3(%arg0: i32) -> (i32, i32) {
    %c0_i32 = arith.constant 0 : i32
    %c0_i32_0 = arith.constant 0 : i32
    %c0_i32_1 = arith.constant 0 : i32
    return %c0_i32, %c0_i32_0 : i32, i32
  }
  func.func @transform_4(%arg0: i32) -> (i32, i32, i32) {
    %c0_i32 = arith.constant 0 : i32
    %c0_i32_0 = arith.constant 0 : i32
    %c0_i32_1 = arith.constant 0 : i32
    %c0_i32_2 = arith.constant 0 : i32
    return %c0_i32, %c0_i32_0, %c0_i32_1 : i32, i32, i32
  }
  func.func @transform_5(%arg0: i32) -> (i32, i32, i32) {
    %c0_i32 = arith.constant 0 : i32
    %c0_i32_0 = arith.constant 0 : i32
    %c0_i32_1 = arith.constant 0 : i32
    %c0_i32_2 = arith.constant 0 : i32
    return %c0_i32, %c0_i32_0, %c0_i32_1 : i32, i32, i32
  }
  func.func @transform_6(%arg0: i32) -> (i32, i32) {
    %c0_i32 = arith.constant 0 : i32
    %c0_i32_0 = arith.constant 0 : i32
    %c0_i32_1 = arith.constant 0 : i32
    return %c0_i32, %c0_i32_0 : i32, i32
  }
  func.func @transform_7(%arg0: i32) -> (i32, i32) {
    %c0_i32 = arith.constant 0 : i32
    %c0_i32_0 = arith.constant 0 : i32
    %c0_i32_1 = arith.constant 0 : i32
    return %c0_i32, %c0_i32_0 : i32, i32
  }
  func.func @transform_8(%arg0: i32) -> (i32, i32) {
    %c0_i32 = arith.constant 0 : i32
    %c0_i32_0 = arith.constant 0 : i32
    %c0_i32_1 = arith.constant 0 : i32
    return %c0_i32, %c0_i32_0 : i32, i32
  }
}

</mosaic_0001>

<bundles_post_ra>
// kernel: tpu_custom_call.1
= control target key start
LH: loop header
LB: loop body
LE: loop exit
PB: predicated region body
PF: predicated region fallthrough
CT: control target
= control target key end

     0   :  { %13 = vsyncpa [#allocation5], 0  ;;  %s2389_s0 = inlined_call_operand.vmem [shape: bf16[128,64], index: 0, kind: input, shape index: {}]   ;;  %s2390_s1 = inlined_call_operand.vmem [shape: bf16[64,128], index: 1, kind: input, shape index: {}]   ;;  %s2391_s2 = inlined_call_operand.vmem [shape: f32[1,128], index: 2, kind: input, shape index: {}]   ;;  %s2392_s3 = inlined_call_operand.vmem [shape: bf16[128,128], index: 3, kind: input, shape index: {}]   ;;  %s2393_s4 = inlined_call_operand.vmem [shape: f32[2,1,128], index: 4, kind: input, shape index: {}]   ;;  %s2394_s5 = inlined_call_operand.vmem [shape: f32[2,1,128], index: 5, kind: input, shape index: {}]   ;;  %s2395_s6 = inlined_call_operand.hbm [shape: bf16[128,128], index: 6, kind: input, shape index: {}]   ;;  %s2396_s7 = inlined_call_operand.vmem [shape: f32[1,128], index: 7, kind: input, shape index: {}]   ;;  %s2397_s8 = inlined_call_operand.hbm [shape: f32[128,128], index: 8, kind: output, shape index: {}]  }
   0x1   :  { %14 = vsyncpa [#allocation6], 0  ;;  %s2161_s27 = smov 0  }
   0x2 LB: > { %s2167_s28 = sadd.s32 4294967295, %s2108_s27   ;;  %p1456_p0 = scmp.ge.s32.totalorder %s2108_s27, 1  ;;  %s2108_s27 = sphi %s2161_s27, %s20_s27  }
   0x3   : > { %p214_p1 = scmp.lt.s32.totalorder %s2108_s27, 3  ;;  %s2110_s29 = smov [#allocation4]  }
   0x4   : > { %s244_s30 = sshll.u32 %s2110_s29, 4  ;;  %p1980_p4 = scmp.eq.s32.totalorder %s2167_s28, 0  ;;  %s245_s30 = int_to_ptr.vmem [resolvable:$true] %s244_s30 }
   0x5   : > { %p2172_p3 = pnand %p1456_p0, %p214_p1  ;;  %s2055_s10 = scalar_lea.vmem %s245_s30, 1024 }
   0x6   : > { %p2056_p8 = scmp.ne.s32.totalorder %s245_s30, %s2055_s10  ;;  %p2063_p11 = scmp.lt.s32.totalorder %s245_s30, %s245_s30 }
   0x7   : > { %p1976_p5 = pneg %p2172_p3  ;;  %p2064_p12 = scmp.lt.s32.totalorder %s2055_s10, %s2055_s10 }
   0x9   : > { %p1977_p6 = pnand %p1980_p4, %p1976_p5  ;;  %p2065_p13 = por %p2064_p12, %p2063_p11 }
   0xb   : > { %p2046_p7 = pneg %p1977_p6 }
   0xd   : > { %p2058_p9 = pnand %p2056_p8, %p2046_p7 }
   0xf   : > { %p2059_p10 = pneg %p2058_p9 }
  0x11   : > { %p2066_p2 = pnand %p2065_p13, %p2059_p10 }
  0x13   : > { %2069 = shalt.err (!%p2066_p2)
}
  0x14   : > { %s2111_s11 = smov 64   ;;  %s2112_s12 = smov 4  }
  0x15   : > { %1979 = dma.hbm_to_vmem [thread:$0]  (!%p1977_p6), %s2395_s6, 1024, %s245_s30, [#allocation5], %s2111_s11, %s2111_s11, %s2112_s12  }
  0x16   : > { %263 = sbr.rel (%p2172_p3) target bundleno = 847 (0x34f), region = 52 }
  0x1b   : > { %2099 = dma.done.wait (%p1980_p4), [#allocation5], 1024  }
  0x1c   : > { %2101 = vsyncadd (%p1980_p4), [#allocation5], 4294966272  ;;  %p2399_p0 = scmp.ne.s32.totalorder %s2167_s28, 0 }
  0x1e   : > { %291 = sbr.rel (%p2399_p0) target bundleno = 269 (0x10d), region = 60 }
  0x23   : > { %v1998_v0 = vld [vmem:[%s2390_s1 + $0x18] sm:$0xff]   ;;  %v1999_v1 = vld [vmem:[%s2390_s1 + $0x10] sm:$0xff]   ;;  %v2000_v2 = vld [vmem:[%s2390_s1 + $0x8] sm:$0xff]   ;;  %vm387_vm0 = vcmask 523264  }
  0x24   : > { %1840 = vmatprep.subr.bf16.mxu0 %v1998_v0  ;;  %1928 = vmatprep.subr.bf16.mxu1 %v1998_v0  ;;  %v2002_v3 = vld [vmem:[%s2389_s0] sm:$0xff]   ;;  %v2004_v6 = vld [vmem:[%s2389_s0 + $0x8] sm:$0xff]   ;;  %v2006_v8 = vld [vmem:[%s2389_s0 + $0x10] sm:$0xff]  }
  0x25   : > { %1841 = vmatpush3.bf16.msra.mxu0 %v1998_v0  ;;  %1932 = vmatpush3.bf16.msra.mxu1 %v1998_v0  ;;  %v2003_v4 = vld [vmem:[%s2389_s0 + $0x20] sm:$0xff]   ;;  %v2005_v7 = vld [vmem:[%s2389_s0 + $0x28] sm:$0xff]   ;;  %v2007_v9 = vld [vmem:[%s2389_s0 + $0x30] sm:$0xff]  }
  0x26   : > { %1842 = vmatprep.subr.bf16.mxu0 %v1999_v1  ;;  %1929 = vmatprep.subr.bf16.mxu1 %v1999_v1  ;;  %v2001_v5 = vld [vmem:[%s2390_s1] sm:$0xff]   ;;  %v2008_v10 = vld [vmem:[%s2389_s0 + $0x18] sm:$0xff]  }
  0x27   : > { %1848 = vmatprep.mubr.msk.bf16.mxu0 %vm387_vm0, %v2002_v3  ;;  %1856 = vmatprep.mubr.msk.bf16.mxu1 %vm387_vm0, %v2003_v4  ;;  %v2009_v11 = vld [vmem:[%s2389_s0 + $0x38] sm:$0xff]   ;;  %v2239_v12 = vld [vmem:[%s2391_s2] ss:$0 sm:$0xff] }
  0x29   : > { %1843 = vmatpush3.bf16.msra.mxu0 %v1999_v1  ;;  %1933 = vmatpush3.bf16.msra.mxu1 %v1999_v1 }
  0x2a   : > { %1844 = vmatprep.subr.bf16.mxu0 %v2000_v2  ;;  %1930 = vmatprep.subr.bf16.mxu1 %v2000_v2 }
  0x2d   : > { %1845 = vmatpush3.bf16.msra.mxu0 %v2000_v2  ;;  %1934 = vmatpush3.bf16.msra.mxu1 %v2000_v2 }
  0x2e   : > { %1846 = vmatprep.subr.bf16.mxu0 %v2001_v5  ;;  %1931 = vmatprep.subr.bf16.mxu1 %v2001_v5 }
  0x31   : > { %1847 = vmatpush3.bf16.msra.mxu0 %v2001_v5  ;;  %1935 = vmatpush3.bf16.msra.mxu1 %v2001_v5 }
  0x34   : > { %1849 = vmatmul.mubr.msk.bf16.vlgmr.msra.gmra.mxu0 %vm387_vm0, %v2004_v6  ;;  %1857 = vmatmul.mubr.msk.bf16.vlgmr.msra.gmra.mxu1 %vm387_vm0, %v2005_v7 }
  0x35   : > { %1852 = vmatprep.mubr.msk.bf16.mxu0 %vm387_vm0, %v2006_v8  ;;  %1860 = vmatprep.mubr.msk.bf16.mxu1 %vm387_vm0, %v2007_v9 }
  0x3c   : > { %1853 = vmatmul.mubr.msk.bf16.gmra.mxu0 %vm387_vm0, %v2008_v10  ;;  %1861 = vmatmul.mubr.msk.bf16.gmra.mxu1 %vm387_vm0, %v2009_v11 }
  0xf4   : > { %v1850_v13 = vpop.f32.mrf.mxu0  ;;  %v1858_v14 = vpop.f32.mrf.mxu1 }
  0xf5   : > { %v455_v15 = vadd.f32 %v1850_v13, %v2239_v12  ;;  %v487_v16 = vadd.f32 %v1858_v14, %v2239_v12 }
  0xf6   : > { %v446_v17 = vpop.f32.mrf.mxu0  ;;  %v478_v18 = vpop.f32.mrf.mxu1 }
  0xf7   : > { %v511_v19 = vmax.f32 %v455_v15, 0.0  ;;  %v519_v20 = vmax.f32 %v487_v16, 0.0  ;;  %v447_v21 = vadd.f32 %v2239_v12, %v446_v17  ;;  %v479_v22 = vadd.f32 %v2239_v12, %v478_v18 }
  0xf8   : > { %v1851_v23 = vpop.f32.mrf.mxu0  ;;  %v1859_v24 = vpop.f32.mrf.mxu1 }
  0xf9   : > { %v509_v25 = vmax.f32 %v447_v21, 0.0  ;;  %v517_v26 = vmax.f32 %v479_v22, 0.0  ;;  %v458_v27 = vadd.f32 %v1851_v23, %v2239_v12  ;;  %v490_v28 = vadd.f32 %v1859_v24, %v2239_v12 }
  0xfa   : > { %v449_v29 = vpop.f32.mrf.mxu0  ;;  %v481_v30 = vpop.f32.mrf.mxu1  ;;  %v607_v31 = vmul.f32 0.1, %v511_v19  ;;  %v615_v32 = vmul.f32 0.1, %v519_v20 }
  0xfb   : > { %v450_v33 = vadd.f32 %v2239_v12, %v449_v29  ;;  %v482_v34 = vadd.f32 %v2239_v12, %v481_v30  ;;  %v605_v35 = vmul.f32 0.1, %v509_v25  ;;  %v613_v36 = vmul.f32 0.1, %v517_v26 }
  0xfc   : > { %v512_v37 = vmax.f32 %v458_v27, 0.0  ;;  %v520_v38 = vmax.f32 %v490_v28, 0.0  ;;  %v1854_v39 = vpop.f32.mrf.mxu0  ;;  %v1862_v40 = vpop.f32.mrf.mxu1 }
  0xfd   : > { %v510_v41 = vmax.f32 %v450_v33, 0.0  ;;  %v518_v42 = vmax.f32 %v482_v34, 0.0  ;;  %v471_v43 = vadd.f32 %v1854_v39, %v2239_v12  ;;  %v503_v44 = vadd.f32 %v1862_v40, %v2239_v12 }
  0xfe   : > { %v1624_v45 = vpack.c.bf16 %v512_v37, %v511_v19  ;;  %v608_v46 = vmul.f32 0.1, %v512_v37  ;;  %v1644_v47 = vpack.c.bf16 %v520_v38, %v519_v20  ;;  %v616_v48 = vmul.f32 0.1, %v520_v38  ;;  %v462_v49 = vpop.f32.mrf.mxu0  ;;  %v494_v50 = vpop.f32.mrf.mxu1 }
  0xff   : > { %v1619_v51 = vpack.c.bf16 %v510_v41, %v509_v25  ;;  %v606_v52 = vmul.f32 0.1, %v510_v41  ;;  %v1639_v53 = vpack.c.bf16 %v518_v42, %v517_v26  ;;  %v614_v54 = vmul.f32 0.1, %v518_v42 }
 0x100   : > { %1768 = vst [vmem:[#allocation2 + $0x8] sm:$0xff] %v1624_v45   ;;  %v1664_v55 = vpack.c.bf16 %v608_v46, %v607_v31  ;;  %1772 = vst [vmem:[#allocation2 + $0x28] sm:$0xff] %v1644_v47   ;;  %v1684_v56 = vpack.c.bf16 %v616_v48, %v615_v32  ;;  %v515_v57 = vmax.f32 %v471_v43, 0.0  ;;  %v523_v58 = vmax.f32 %v503_v44, 0.0  ;;  %v1855_v59 = vpop.f32.mrf.mxu0  ;;  %v1863_v60 = vpop.f32.mrf.mxu1 }
 0x101   : > { %1620 = vst [vmem:[#allocation2] sm:$0xff] %v1619_v51   ;;  %v1659_v61 = vpack.c.bf16 %v606_v52, %v605_v35  ;;  %1771 = vst [vmem:[#allocation2 + $0x20] sm:$0xff] %v1639_v53   ;;  %v1679_v62 = vpack.c.bf16 %v614_v54, %v613_v36  ;;  %v463_v63 = vadd.f32 %v2239_v12, %v462_v49 }
 0x102   : > { %v495_v0 = vadd.f32 %v2239_v12, %v494_v50  ;;  %1775 = vst [vmem:[#allocation3] sm:$0xff] %v1664_v55   ;;  %1779 = vst [vmem:[#allocation3 + $0x20] sm:$0xff] %v1684_v56   ;;  %v474_v1 = vadd.f32 %v1855_v59, %v2239_v12  ;;  %v506_v2 = vadd.f32 %v1863_v60, %v2239_v12  ;;  %v465_v3 = vpop.f32.mrf.mxu0  ;;  %v497_v4 = vpop.f32.mrf.mxu1  ;;  %v611_v9 = vmul.f32 0.1, %v515_v57 }
 0x103   : > { %1660 = vst [vmem:[#allocation3 + $0x30] sm:$0xff] %v1659_v61   ;;  %1778 = vst [vmem:[#allocation3 + $0x8] sm:$0xff] %v1679_v62   ;;  %v513_v5 = vmax.f32 %v463_v63, 0.0  ;;  %v466_v7 = vadd.f32 %v2239_v12, %v465_v3  ;;  %v498_v8 = vadd.f32 %v2239_v12, %v497_v4  ;;  %v619_v10 = vmul.f32 0.1, %v523_v58 }
 0x104   : > { %v521_v6 = vmax.f32 %v495_v0, 0.0  ;;  %v516_v11 = vmax.f32 %v474_v1, 0.0  ;;  %v524_v13 = vmax.f32 %v506_v2, 0.0 }
 0x105   : > { %v609_v14 = vmul.f32 0.1, %v513_v5  ;;  %v514_v16 = vmax.f32 %v466_v7, 0.0  ;;  %v522_v17 = vmax.f32 %v498_v8, 0.0 }
 0x106   : > { %v617_v15 = vmul.f32 0.1, %v521_v6  ;;  %v1634_v18 = vpack.c.bf16 %v516_v11, %v515_v57  ;;  %v612_v19 = vmul.f32 0.1, %v516_v11  ;;  %v1654_v20 = vpack.c.bf16 %v524_v13, %v523_v58 }
 0x107   : > { %v620_v21 = vmul.f32 0.1, %v524_v13  ;;  %v1629_v22 = vpack.c.bf16 %v514_v16, %v513_v5  ;;  %v610_v23 = vmul.f32 0.1, %v514_v16  ;;  %v1649_v24 = vpack.c.bf16 %v522_v17, %v521_v6 }
 0x108   : > { %v618_v25 = vmul.f32 0.1, %v522_v17  ;;  %1770 = vst [vmem:[#allocation2 + $0x18] sm:$0xff] %v1634_v18   ;;  %v1674_v26 = vpack.c.bf16 %v612_v19, %v611_v9  ;;  %1774 = vst [vmem:[#allocation2 + $0x38] sm:$0xff] %v1654_v20  }
 0x109   : > { %v1694_v12 = vpack.c.bf16 %v620_v21, %v619_v10  ;;  %1769 = vst [vmem:[#allocation2 + $0x10] sm:$0xff] %v1629_v22   ;;  %v1669_v27 = vpack.c.bf16 %v610_v23, %v609_v14  ;;  %1773 = vst [vmem:[#allocation2 + $0x30] sm:$0xff] %v1649_v24  }
 0x10a   : > { %v1689_v28 = vpack.c.bf16 %v618_v25, %v617_v15  ;;  %1777 = vst [vmem:[#allocation3 + $0x10] sm:$0xff] %v1674_v26  }
 0x10b   : > { %1781 = vst [vmem:[#allocation3 + $0x38] sm:$0xff] %v1694_v12   ;;  %1776 = vst [vmem:[#allocation3 + $0x18] sm:$0xff] %v1669_v27  }
 0x10c   : > { %1780 = vst [vmem:[#allocation3 + $0x28] sm:$0xff] %v1689_v28  }
 0x10d PF: > { %v2012_v31 = vld [vmem:[#allocation2 + $0x28] sm:$0xff]   ;;  %v2013_v32 = vld [vmem:[#allocation2 + $0x20] sm:$0xff]   ;;  %v2020_v41 = vld [vmem:[%s2392_s3 + $0x10] sm:$0xff]   ;;  %s1020_s19 = scalar_lea.vmem %s2393_s4, %s2167_s28  ;;  %s1025_s22 = scalar_lea.vmem %s2394_s5, %s2167_s28 }
 0x10e   : > { %v2018_v33 = vld [vmem:[%s2392_s3] sm:$0xff]   ;;  %v2016_v37 = vld [vmem:[#allocation2 + $0x8] sm:$0xff]   ;;  %v2024_v42 = vld [vmem:[%s2392_s3 + $0x30] sm:$0xff]   ;;  %p1546_p1 = scmp.ne.s32.totalorder %s2167_s28, 1 }
 0x10f   : > { %v2010_v29 = vld [vmem:[#allocation2 + $0x38] sm:$0xff]   ;;  %1880 = vmatprep.mubr.bf16.mxu0 %v2018_v33  ;;  %v2022_v35 = vld [vmem:[%s2392_s3 + $0x20] sm:$0xff]   ;;  %v2019_v39 = vld [vmem:[%s2392_s3 + $0x8] sm:$0xff]  }
 0x110   : > { %v2011_v30 = vld [vmem:[#allocation2 + $0x30] sm:$0xff]   ;;  %1864 = vmatprep.subr.bf16.mxu0 %v2010_v29  ;;  %1936 = vmatprep.subr.bf16.mxu1 %v2010_v29  ;;  %v2014_v34 = vld [vmem:[#allocation2 + $0x18] sm:$0xff]   ;;  %v2017_v38 = vld [vmem:[#allocation2] sm:$0xff]  }
 0x111   : > { %1865 = vmatpush3.bf16.msra.mxu0 %v2010_v29  ;;  %1944 = vmatpush3.bf16.msra.mxu1 %v2010_v29  ;;  %v2015_v36 = vld [vmem:[#allocation2 + $0x10] sm:$0xff]   ;;  %v2023_v40 = vld [vmem:[%s2392_s3 + $0x28] sm:$0xff]   ;;  %v2021_v43 = vld [vmem:[%s2392_s3 + $0x18] sm:$0xff]  }
 0x112   : > { %1866 = vmatprep.subr.bf16.mxu0 %v2011_v30  ;;  %1937 = vmatprep.subr.bf16.mxu1 %v2011_v30  ;;  %v2025_v44 = vld [vmem:[%s2392_s3 + $0x38] sm:$0xff]   ;;  %v1697_v45 = vld [vmem:[#allocation3 + $0x30] sm:$0xff]   ;;  %v1782_v46 = vld [vmem:[#allocation3] sm:$0xff]  }
 0x113   : > { %1888 = vmatprep.mubr.bf16.mxu1 %v2022_v35  ;;  %v1698_v49 = vunpack.c.l.bf16 %v1697_v45  ;;  %v1702_v52 = vunpack.c.l.bf16 %v1782_v46  ;;  %v1699_v53 = vunpack.c.h.bf16 %v1697_v45  ;;  %v1783_v55 = vld [vmem:[#allocation3 + $0x18] sm:$0xff]   ;;  %v1703_v57 = vunpack.c.h.bf16 %v1782_v46  ;;  %v1784_v62 = vld [vmem:[#allocation3 + $0x10] sm:$0xff]   ;;  %v1785_v14 = vld [vmem:[#allocation3 + $0x8] sm:$0xff]  }
 0x114   : > { %v1706_v63 = vunpack.c.l.bf16 %v1783_v55  ;;  %v1710_v5 = vunpack.c.l.bf16 %v1784_v62  ;;  %v1707_v7 = vunpack.c.h.bf16 %v1783_v55  ;;  %v1711_v19 = vunpack.c.h.bf16 %v1784_v62  ;;  %v1786_v12 = vld [vmem:[#allocation3 + $0x20] sm:$0xff]  }
 0x115   : > { %1867 = vmatpush3.bf16.msra.mxu0 %v2011_v30  ;;  %1945 = vmatpush3.bf16.msra.mxu1 %v2011_v30  ;;  %v1714_v21 = vunpack.c.l.bf16 %v1785_v14  ;;  %v1715_v28 = vunpack.c.h.bf16 %v1785_v14  ;;  %v1718_v33 = vunpack.c.l.bf16 %v1786_v12 }
 0x116   : > { %1868 = vmatprep.subr.bf16.mxu0 %v2012_v31  ;;  %1938 = vmatprep.subr.bf16.mxu1 %v2012_v31 }
 0x119   : > { %1869 = vmatpush3.bf16.msra.mxu0 %v2012_v31  ;;  %1946 = vmatpush3.bf16.msra.mxu1 %v2012_v31 }
 0x11a   : > { %1870 = vmatprep.subr.bf16.mxu0 %v2013_v32  ;;  %1939 = vmatprep.subr.bf16.mxu1 %v2013_v32 }
 0x11d   : > { %1871 = vmatpush3.bf16.msra.mxu0 %v2013_v32  ;;  %1947 = vmatpush3.bf16.msra.mxu1 %v2013_v32 }
 0x11e   : > { %1872 = vmatprep.subr.bf16.mxu0 %v2014_v34  ;;  %1940 = vmatprep.subr.bf16.mxu1 %v2014_v34 }
 0x121   : > { %1873 = vmatpush3.bf16.msra.mxu0 %v2014_v34  ;;  %1948 = vmatpush3.bf16.msra.mxu1 %v2014_v34 }
 0x122   : > { %1874 = vmatprep.subr.bf16.mxu0 %v2015_v36  ;;  %1941 = vmatprep.subr.bf16.mxu1 %v2015_v36 }
 0x125   : > { %1875 = vmatpush3.bf16.msra.mxu0 %v2015_v36  ;;  %1949 = vmatpush3.bf16.msra.mxu1 %v2015_v36 }
 0x126   : > { %1876 = vmatprep.subr.bf16.mxu0 %v2016_v37  ;;  %1942 = vmatprep.subr.bf16.mxu1 %v2016_v37 }
 0x129   : > { %1877 = vmatpush3.bf16.msra.mxu0 %v2016_v37  ;;  %1950 = vmatpush3.bf16.msra.mxu1 %v2016_v37 }
 0x12a   : > { %1878 = vmatprep.subr.bf16.mxu0 %v2017_v38  ;;  %1943 = vmatprep.subr.bf16.mxu1 %v2017_v38 }
 0x12d   : > { %1879 = vmatpush3.bf16.msra.mxu0 %v2017_v38  ;;  %1951 = vmatpush3.bf16.msra.mxu1 %v2017_v38 }
 0x130   : > { %1881 = vmatmul.mubr.bf16.vlgmr.msra.gmra.mxu0 %v2019_v39  ;;  %1889 = vmatmul.mubr.bf16.vlgmr.msra.gmra.mxu1 %v2023_v40  ;;  %v1787_v39 = vld [vmem:[#allocation3 + $0x28] sm:$0xff]   ;;  %v1719_v40 = vunpack.c.h.bf16 %v1786_v12 }
 0x131   : > { %1884 = vmatprep.mubr.bf16.mxu0 %v2020_v41  ;;  %1892 = vmatprep.mubr.bf16.mxu1 %v2024_v42  ;;  %v1722_v45 = vunpack.c.l.bf16 %v1787_v39 }
 0x138   : > { %1885 = vmatmul.mubr.bf16.gmra.mxu0 %v2021_v43  ;;  %1893 = vmatmul.mubr.bf16.gmra.mxu1 %v2025_v44 }
 0x1f0   : > { %v1882_v47 = vpop.f32.mrf.mxu0  ;;  %v2281_v48 = vpop.f32.mrf.mxu1 }
 0x1f1   : > { %v2285_v60 = vadd.f32 %v1882_v47, %v1702_v52  ;;  %v2328_v47 = vadd.f32 %v2281_v48, %v1718_v33  ;;  %v1788_v52 = vld [vmem:[#allocation3 + $0x38] sm:$0xff]  }
 0x1f2   : > { %v895_v50 = vpop.f32.mrf.mxu0  ;;  %v927_v51 = vpop.f32.mrf.mxu1  ;;  %v1726_v62 = vunpack.c.l.bf16 %v1788_v52 }
 0x1f3   : > { %v2283_v56 = vadd.f32 %v1698_v49, %v895_v50  ;;  %v982_v9 = vmul.f32 %v2285_v60, %v2285_v60  ;;  %v2319_v36 = vadd.f32 %v1714_v21, %v927_v51  ;;  %v990_v48 = vmul.f32 %v2328_v47, %v2328_v47 }
 0x1f4   : > { %v1883_v54 = vpop.f32.mrf.mxu0  ;;  %v1891_v59 = vpop.f32.mrf.mxu1 }
 0x1f5   : > { %v980_v1 = vmul.f32 %v2283_v56, %v2283_v56  ;;  %v2291_v2 = vadd.f32 %v1883_v54, %v1703_v57  ;;  %v988_v49 = vmul.f32 %v2319_v36, %v2319_v36  ;;  %v2333_v54 = vadd.f32 %v1891_v59, %v1719_v40 }
 0x1f6   : > { %v898_v58 = vpop.f32.mrf.mxu0  ;;  %v930_v8 = vpop.f32.mrf.mxu1 }
 0x1f7   : > { %v2287_v61 = vadd.f32 %v1699_v53, %v898_v58  ;;  %v983_v16 = vmul.f32 %v2291_v2, %v2291_v2  ;;  %v2324_v43 = vadd.f32 %v1715_v28, %v930_v8  ;;  %v1723_v53 = vunpack.c.h.bf16 %v1787_v39 }
 0x1f8   : > { %v1886_v0 = vpop.f32.mrf.mxu0  ;;  %v1894_v23 = vpop.f32.mrf.mxu1  ;;  %v991_v59 = vmul.f32 %v2333_v54, %v2333_v54 }
 0x1f9   : > { %v958_v3 = vadd.f32 %v2287_v61, %v2283_v56  ;;  %v981_v4 = vmul.f32 %v2287_v61, %v2287_v61  ;;  %v2305_v20 = vadd.f32 %v1886_v0, %v1710_v5  ;;  %v989_v57 = vmul.f32 %v2324_v43, %v2324_v43 }
 0x1fa   : > { %v911_v6 = vpop.f32.mrf.mxu0  ;;  %v943_v34 = vpop.f32.mrf.mxu1  ;;  %v952_v8 = vadd.f32 %v1894_v23, %v1726_v62 }
 0x1fb   : > { %v959_v10 = vadd.f32 %v958_v3, %v2285_v60  ;;  %v996_v11 = vadd.f32 %v981_v4, %v980_v1  ;;  %v2300_v13 = vadd.f32 %v1706_v63, %v911_v6  ;;  %v986_v35 = vmul.f32 %v2305_v20, %v2305_v20 }
 0x1fc   : > { %v1887_v15 = vpop.f32.mrf.mxu0  ;;  %v1895_v46 = vpop.f32.mrf.mxu1  ;;  %v2341_v3 = vadd.f32 %v1722_v45, %v943_v34  ;;  %v1727_v4 = vunpack.c.h.bf16 %v1788_v52 }
 0x1fd   : > { %v997_v17 = vadd.f32 %v996_v11, %v982_v9  ;;  %v960_v18 = vadd.f32 %v959_v10, %v2291_v2  ;;  %v984_v25 = vmul.f32 %v2300_v13, %v2300_v13  ;;  %v2312_v30 = vadd.f32 %v1887_v15, %v1711_v19 }
 0x1fe   : > { %v914_v22 = vpop.f32.mrf.mxu0  ;;  %v946_v63 = vpop.f32.mrf.mxu1  ;;  %v992_v10 = vmul.f32 %v2341_v3, %v2341_v3  ;;  %v955_v15 = vadd.f32 %v1895_v46, %v1727_v4  ;;  %v1030_v46 = vlaneseq }
 0x1ff   : > { %v961_v24 = vadd.f32 %v960_v18, %v2300_v13  ;;  %v998_v26 = vadd.f32 %v997_v17, %v983_v16  ;;  %v2310_v27 = vadd.f32 %v1707_v7, %v914_v22  ;;  %v987_v41 = vmul.f32 %v2312_v30, %v2312_v30 }
 0x200   : > { %v947_v7 = vadd.f32 %v1723_v53, %v946_v63  ;;  %v994_v18 = vmul.f32 %v952_v8, %v952_v8  ;;  %v995_v22 = vmul.f32 %v955_v15, %v955_v15 }
 0x201   : > { %v999_v29 = vadd.f32 %v998_v26, %v984_v25  ;;  %v962_v31 = vadd.f32 %v961_v24, %v2310_v27  ;;  %v985_v32 = vmul.f32 %v2310_v27, %v2310_v27 }
 0x202   : > { %v993_v17 = vmul.f32 %v947_v7, %v947_v7 }
 0x203   : > { %v963_v37 = vadd.f32 %v962_v31, %v2305_v20  ;;  %v1000_v38 = vadd.f32 %v999_v29, %v985_v32 }
 0x205   : > { %v1001_v42 = vadd.f32 %v1000_v38, %v986_v35  ;;  %v964_v44 = vadd.f32 %v963_v37, %v2312_v30 }
 0x207   : > { %v965_v50 = vadd.f32 %v964_v44, %v2319_v36  ;;  %v1002_v51 = vadd.f32 %v1001_v42, %v987_v41 }
 0x209   : > { %v966_v55 = vadd.f32 %v965_v50, %v2324_v43  ;;  %v1003_v58 = vadd.f32 %v1002_v51, %v988_v49  ;;  %v1031_v49 = vshrl.u32 %v1030_v46, 7  ;;  %v1021_v50 = vld [vmem:[%s1020_s19] sm:$0x1] }
 0x20b   : > { %v967_v0 = vadd.f32 %v966_v55, %v2328_v47  ;;  %v1004_v1 = vadd.f32 %v1003_v58, %v989_v57  ;;  %v1032_v51 = vsub.s32 0, %v1031_v49  ;;  %v1026_v55 = vld [vmem:[%s1025_s22] sm:$0x1] }
 0x20d   : > { %v1005_v5 = vadd.f32 %v1004_v1, %v990_v48  ;;  %v968_v6 = vadd.f32 %v967_v0, %v2333_v54 }
 0x20f   : > { %v969_v9 = vadd.f32 %v968_v6, %v2341_v3  ;;  %v1006_v11 = vadd.f32 %v1005_v5, %v991_v59 }
 0x211   : > { %v1007_v14 = vadd.f32 %v1006_v11, %v992_v10  ;;  %v970_v16 = vadd.f32 %v969_v9, %v947_v7 }
 0x213   : > { %v971_v19 = vadd.f32 %v970_v16, %v952_v8  ;;  %v1008_v21 = vadd.f32 %v1007_v14, %v993_v17 }
 0x215   : > { %v972_v24 = vadd.f32 %v971_v19, %v955_v15  ;;  %v1009_v25 = vadd.f32 %v1008_v21, %v994_v18 }
 0x217   : > { %v973_v26 = vrot.slane %v972_v24, 4  ;;  %v1010_v12 = vadd.f32 %v1009_v25, %v995_v22 }
 0x219   : > { %v974_v28 = vadd.f32 %v973_v26, %v972_v24  ;;  %v1011_v23 = vrot.slane %v1010_v12, 4 }
 0x21b   : > { %v975_v29 = vrot.slane %v974_v28, 2  ;;  %v1012_v31 = vadd.f32 %v1011_v23, %v1010_v12 }
 0x21d   : > { %v976_v32 = vadd.f32 %v975_v29, %v974_v28  ;;  %v1013_v33 = vrot.slane %v1012_v31, 2 }
 0x21f   : > { %v977_v34 = vrot.slane %v976_v32, 1  ;;  %v1014_v35 = vadd.f32 %v1013_v33, %v1012_v31 }
 0x221   : > { %v978_v37 = vadd.f32 %v977_v34, %v976_v32  ;;  %v1015_v38 = vrot.slane %v1014_v35, 1 }
 0x223   : > { %v979_v39 = vmul.f32 0.0078125, %v978_v37  ;;  %v1016_v40 = vadd.f32 %v1015_v38, %v1014_v35 }
 0x225   : > { %v1017_v41 = vmul.f32 0.0078125, %v1016_v40  ;;  %v1018_v42 = vmul.f32 %v979_v39, %v979_v39 }
 0x227   : > { %v1019_v44 = vsub.f32 %v1017_v41, %v1018_v42 }
 0x229   : > { %v1022_v45 = vadd.f32 1e-05, %v1019_v44 }
 0x22b   : > { %2026 = vrsqrt.f32 %v1022_v45 }
 0x238   : > { %v2027_v52 = vpop.eup %2026 }
 0x239   : > { %v1024_v53 = vmul.f32 %v2027_v52, %v1021_v50 }
 0x23b   : > { %v1027_v57 = vmul.f32 %v1024_v53, %v979_v39  ;;  %v1033_v58 = vrot.slane %v1024_v53, %v1032_v51 }
 0x23d   : > { %v1028_v62 = vsub.f32 %v1026_v55, %v1027_v57  ;;  %v1035_v63 = vmul.f32 %v1033_v58, %v2283_v56  ;;  %v1036_v48 = vmul.f32 %v1033_v58, %v2287_v61  ;;  %v1037_v0 = vmul.f32 %v1033_v58, %v2285_v60 }
 0x23e   : > { %v1038_v1 = vmul.f32 %v1033_v58, %v2291_v2  ;;  %v1039_v4 = vmul.f32 %v1033_v58, %v2300_v13  ;;  %v1040_v59 = vmul.f32 %v1033_v58, %v2310_v27  ;;  %v1041_v5 = vmul.f32 %v1033_v58, %v2305_v20 }
 0x23f   : > { %v1042_v6 = vmul.f32 %v1033_v58, %v2312_v30  ;;  %v1043_v9 = vmul.f32 %v1033_v58, %v2319_v36  ;;  %v1044_v10 = vmul.f32 %v1033_v58, %v2324_v43  ;;  %v1045_v56 = vmul.f32 %v1033_v58, %v2328_v47 }
 0x240   : > { %v1046_v61 = vmul.f32 %v1033_v58, %v2333_v54  ;;  %v1055_v11 = vrot.slane %v1028_v62, %v1032_v51  ;;  %v1047_v60 = vmul.f32 %v1033_v58, %v2341_v3  ;;  %v1048_v2 = vmul.f32 %v1033_v58, %v947_v7 }
 0x241   : > { %v1049_v14 = vmul.f32 %v1033_v58, %v952_v8  ;;  %v1050_v13 = vmul.f32 %v1033_v58, %v955_v15 }
 0x242   : > { %v1057_v16 = vadd.f32 %v1055_v11, %v1035_v63  ;;  %v1058_v27 = vadd.f32 %v1055_v11, %v1036_v48  ;;  %v1059_v17 = vadd.f32 %v1055_v11, %v1037_v0  ;;  %v1060_v20 = vadd.f32 %v1055_v11, %v1038_v1 }
 0x243   : > { %v1061_v18 = vadd.f32 %v1055_v11, %v1039_v4  ;;  %v1062_v30 = vadd.f32 %v1055_v11, %v1040_v59  ;;  %v1063_v19 = vadd.f32 %v1055_v11, %v1041_v5  ;;  %v1064_v36 = vadd.f32 %v1055_v11, %v1042_v6 }
 0x244   : > { %v1065_v21 = vadd.f32 %v1055_v11, %v1043_v9  ;;  %v1066_v43 = vadd.f32 %v1055_v11, %v1044_v10  ;;  %v1067_v22 = vadd.f32 %v1055_v11, %v1045_v56  ;;  %v1068_v47 = vadd.f32 %v1055_v11, %v1046_v61 }
 0x245   : > { %v1069_v24 = vadd.f32 %v1055_v11, %v1047_v60  ;;  %v1070_v54 = vadd.f32 %v1055_v11, %v1048_v2  ;;  %v1071_v25 = vadd.f32 %v1055_v11, %v1049_v14  ;;  %v1072_v26 = vadd.f32 %v1055_v11, %v1050_v13 }
 0x246   : > { %v1731_v3 = vpack.c.bf16 %v1058_v27, %v1057_v16  ;;  %v1736_v7 = vpack.c.bf16 %v1060_v20, %v1059_v17  ;;  %v1741_v8 = vpack.c.bf16 %v1062_v30, %v1061_v18  ;;  %v1746_v15 = vpack.c.bf16 %v1064_v36, %v1063_v19 }
 0x247   : > { %v1751_v12 = vpack.c.bf16 %v1066_v43, %v1065_v21  ;;  %v1756_v28 = vpack.c.bf16 %v1068_v47, %v1067_v22  ;;  %v1761_v23 = vpack.c.bf16 %v1070_v54, %v1069_v24  ;;  %v1766_v29 = vpack.c.bf16 %v1072_v26, %v1071_v25  ;;  %1156 = sbr.rel (%p1546_p1) target bundleno = 831 (0x33f), region = 64 }
 0x248   : > { %1732 = vst [vmem:[#allocation2] sm:$0xff] %v1731_v3   ;;  %1789 = vst [vmem:[#allocation2 + $0x8] sm:$0xff] %v1736_v7  }
 0x249   : > { %1790 = vst [vmem:[#allocation2 + $0x10] sm:$0xff] %v1741_v8   ;;  %1791 = vst [vmem:[#allocation2 + $0x18] sm:$0xff] %v1746_v15  }
 0x24a   : > { %1792 = vst [vmem:[#allocation2 + $0x20] sm:$0xff] %v1751_v12   ;;  %1793 = vst [vmem:[#allocation2 + $0x28] sm:$0xff] %v1756_v28  }
 0x24b   : > { %1794 = vst [vmem:[#allocation2 + $0x30] sm:$0xff] %v1761_v23   ;;  %1795 = vst [vmem:[#allocation2 + $0x38] sm:$0xff] %v1766_v29  }
 0x24c   : > { %v2028_v31 = vld [vmem:[#allocation4 + $0x38] sm:$0xff]   ;;  %v2029_v32 = vld [vmem:[#allocation4 + $0x30] sm:$0xff]   ;;  %v2030_v33 = vld [vmem:[#allocation4 + $0x28] sm:$0xff]  }
 0x24d   : > { %1896 = vmatprep.subr.bf16.mxu0 %v2028_v31  ;;  %1952 = vmatprep.subr.bf16.mxu1 %v2028_v31  ;;  %v2031_v34 = vld [vmem:[#allocation4 + $0x20] sm:$0xff]   ;;  %v2032_v38 = vld [vmem:[#allocation4 + $0x18] sm:$0xff]   ;;  %v2033_v39 = vld [vmem:[#allocation4 + $0x10] sm:$0xff]  }
 0x24e   : > { %1897 = vmatpush3.bf16.msra.mxu0 %v2028_v31  ;;  %1960 = vmatpush3.bf16.msra.mxu1 %v2028_v31  ;;  %v2034_v40 = vld [vmem:[#allocation4 + $0x8] sm:$0xff]   ;;  %v2035_v41 = vld [vmem:[#allocation4] sm:$0xff]  }
 0x24f   : > { %1898 = vmatprep.subr.bf16.mxu0 %v2029_v32  ;;  %1953 = vmatprep.subr.bf16.mxu1 %v2029_v32  ;;  %v2036_v35 = vld [vmem:[#allocation2] sm:$0xff]   ;;  %v2038_v42 = vld [vmem:[#allocation2 + $0x8] sm:$0xff]  }
 0x250   : > { %1912 = vmatprep.mubr.bf16.mxu0 %v2036_v35  ;;  %v2040_v45 = vld [vmem:[#allocation2 + $0x10] sm:$0xff]   ;;  %v2042_v49 = vld [vmem:[#allocation2 + $0x18] sm:$0xff]   ;;  %v1547_v51 = vld [vmem:[%s2396_s7] ss:$0 sm:$0xff] }
 0x251   : > { %v2037_v37 = vld [vmem:[#allocation2 + $0x20] sm:$0xff]   ;;  %v2039_v44 = vld [vmem:[#allocation2 + $0x28] sm:$0xff]  }
 0x252   : > { %1899 = vmatpush3.bf16.msra.mxu0 %v2029_v32  ;;  %1961 = vmatpush3.bf16.msra.mxu1 %v2029_v32  ;;  %v2041_v46 = vld [vmem:[#allocation2 + $0x30] sm:$0xff]   ;;  %v2043_v50 = vld [vmem:[#allocation2 + $0x38] sm:$0xff]  }
 0x253   : > { %1900 = vmatprep.subr.bf16.mxu0 %v2030_v33  ;;  %1954 = vmatprep.subr.bf16.mxu1 %v2030_v33 }
 0x254   : > { %1920 = vmatprep.mubr.bf16.mxu1 %v2037_v37 }
 0x256   : > { %1901 = vmatpush3.bf16.msra.mxu0 %v2030_v33  ;;  %1962 = vmatpush3.bf16.msra.mxu1 %v2030_v33 }
 0x257   : > { %1902 = vmatprep.subr.bf16.mxu0 %v2031_v34  ;;  %1955 = vmatprep.subr.bf16.mxu1 %v2031_v34 }
 0x25a   : > { %1903 = vmatpush3.bf16.msra.mxu0 %v2031_v34  ;;  %1963 = vmatpush3.bf16.msra.mxu1 %v2031_v34 }
 0x25b   : > { %1904 = vmatprep.subr.bf16.mxu0 %v2032_v38  ;;  %1956 = vmatprep.subr.bf16.mxu1 %v2032_v38 }
 0x25e   : > { %1905 = vmatpush3.bf16.msra.mxu0 %v2032_v38  ;;  %1964 = vmatpush3.bf16.msra.mxu1 %v2032_v38 }
 0x25f   : > { %1906 = vmatprep.subr.bf16.mxu0 %v2033_v39  ;;  %1957 = vmatprep.subr.bf16.mxu1 %v2033_v39 }
 0x262   : > { %1907 = vmatpush3.bf16.msra.mxu0 %v2033_v39  ;;  %1965 = vmatpush3.bf16.msra.mxu1 %v2033_v39 }
 0x263   : > { %1908 = vmatprep.subr.bf16.mxu0 %v2034_v40  ;;  %1958 = vmatprep.subr.bf16.mxu1 %v2034_v40 }
 0x266   : > { %1909 = vmatpush3.bf16.msra.mxu0 %v2034_v40  ;;  %1966 = vmatpush3.bf16.msra.mxu1 %v2034_v40 }
 0x267   : > { %1910 = vmatprep.subr.bf16.mxu0 %v2035_v41  ;;  %1959 = vmatprep.subr.bf16.mxu1 %v2035_v41 }
 0x26a   : > { %1911 = vmatpush3.bf16.msra.mxu0 %v2035_v41  ;;  %1967 = vmatpush3.bf16.msra.mxu1 %v2035_v41 }
 0x26d   : > { %1913 = vmatmul.mubr.bf16.vlgmr.msra.gmra.mxu0 %v2038_v42  ;;  %1921 = vmatmul.mubr.bf16.vlgmr.msra.gmra.mxu1 %v2039_v44 }
 0x26e   : > { %1916 = vmatprep.mubr.bf16.mxu0 %v2040_v45  ;;  %1924 = vmatprep.mubr.bf16.mxu1 %v2041_v46 }
 0x275   : > { %1917 = vmatmul.mubr.bf16.gmra.mxu0 %v2042_v49  ;;  %1925 = vmatmul.mubr.bf16.gmra.mxu1 %v2043_v50 }
 0x32d   : > { %v1914_v52 = vpop.f32.mrf.mxu0  ;;  %v1922_v53 = vpop.f32.mrf.mxu1 }
 0x32e   : > { %v1335_v55 = vadd.f32 %v1914_v52, %v1547_v51  ;;  %v1367_v57 = vadd.f32 %v1922_v53, %v1547_v51 }
 0x32f   : > { %v1326_v58 = vpop.f32.mrf.mxu0  ;;  %v1358_v62 = vpop.f32.mrf.mxu1 }
 0x330   : > { %1391 = vst [vmem:[#allocation7 + $0x10] sm:$0xff] %v1335_v55  ;;  %1399 = vst [vmem:[#allocation7 + $0x50] sm:$0xff] %v1367_v57  ;;  %v1327_v63 = vadd.f32 %v1547_v51, %v1326_v58  ;;  %v1359_v48 = vadd.f32 %v1547_v51, %v1358_v62 }
 0x331   : > { %v1915_v0 = vpop.f32.mrf.mxu0  ;;  %v1923_v1 = vpop.f32.mrf.mxu1 }
 0x332   : > { %1389 = vst [vmem:[#allocation7] sm:$0xff] %v1327_v63  ;;  %1397 = vst [vmem:[#allocation7 + $0x40] sm:$0xff] %v1359_v48  ;;  %v1338_v4 = vadd.f32 %v1915_v0, %v1547_v51  ;;  %v1370_v59 = vadd.f32 %v1923_v1, %v1547_v51 }
 0x333   : > { %v1329_v5 = vpop.f32.mrf.mxu0  ;;  %v1361_v6 = vpop.f32.mrf.mxu1 }
 0x334   : > { %1392 = vst [vmem:[#allocation7 + $0x18] sm:$0xff] %v1338_v4  ;;  %1400 = vst [vmem:[#allocation7 + $0x58] sm:$0xff] %v1370_v59  ;;  %v1330_v9 = vadd.f32 %v1547_v51, %v1329_v5  ;;  %v1362_v10 = vadd.f32 %v1547_v51, %v1361_v6 }
 0x335   : > { %v1918_v56 = vpop.f32.mrf.mxu0  ;;  %v1926_v61 = vpop.f32.mrf.mxu1 }
 0x336   : > { %1390 = vst [vmem:[#allocation7 + $0x8] sm:$0xff] %v1330_v9  ;;  %1398 = vst [vmem:[#allocation7 + $0x48] sm:$0xff] %v1362_v10  ;;  %v1351_v11 = vadd.f32 %v1918_v56, %v1547_v51  ;;  %v1383_v60 = vadd.f32 %v1926_v61, %v1547_v51 }
 0x337   : > { %v1342_v2 = vpop.f32.mrf.mxu0  ;;  %v1374_v14 = vpop.f32.mrf.mxu1 }
 0x338   : > { %1395 = vst [vmem:[#allocation7 + $0x30] sm:$0xff] %v1351_v11  ;;  %1403 = vst [vmem:[#allocation7 + $0x70] sm:$0xff] %v1383_v60  ;;  %v1343_v13 = vadd.f32 %v1547_v51, %v1342_v2  ;;  %v1375_v16 = vadd.f32 %v1547_v51, %v1374_v14 }
 0x339   : > { %v1919_v27 = vpop.f32.mrf.mxu0  ;;  %v1927_v17 = vpop.f32.mrf.mxu1 }
 0x33a   : > { %1393 = vst [vmem:[#allocation7 + $0x20] sm:$0xff] %v1343_v13  ;;  %1401 = vst [vmem:[#allocation7 + $0x60] sm:$0xff] %v1375_v16  ;;  %v1354_v20 = vadd.f32 %v1919_v27, %v1547_v51  ;;  %v1386_v18 = vadd.f32 %v1927_v17, %v1547_v51 }
 0x33b   : > { %v1345_v30 = vpop.f32.mrf.mxu0  ;;  %v1377_v19 = vpop.f32.mrf.mxu1 }
 0x33c   : > { %1396 = vst [vmem:[#allocation7 + $0x38] sm:$0xff] %v1354_v20  ;;  %1404 = vst [vmem:[#allocation7 + $0x78] sm:$0xff] %v1386_v18  ;;  %v1346_v36 = vadd.f32 %v1547_v51, %v1345_v30  ;;  %v1378_v21 = vadd.f32 %v1547_v51, %v1377_v19 }
 0x33e   : > { %1394 = vst [vmem:[#allocation7 + $0x28] sm:$0xff] %v1346_v36  ;;  %1402 = vst [vmem:[#allocation7 + $0x68] sm:$0xff] %v1378_v21 }
 0x33f PF: > { %p1982_p2 = scmp.eq.s32.totalorder %s2167_s28, 1  ;;  %s2113_s25 = smov [#allocation7]  }
 0x340   : > { %s1411_s26 = sshll.u32 %s2113_s25, 4  ;;  %s1412_s26 = int_to_ptr.vmem [resolvable:$true] %s1411_s26 }
 0x341   : > { %s2070_s29 = scalar_lea.vmem %s1412_s26, 2048  ;;  %p2077_p6 = scmp.lt.s32.totalorder %s1412_s26, %s1412_s26 }
 0x342   : > { %p2071_p3 = scmp.ne.s32.totalorder %s1412_s26, %s2070_s29  ;;  %p2078_p7 = scmp.lt.s32.totalorder %s2070_s29, %s2070_s29 }
 0x344   : > { %p2072_p4 = pnand %p2071_p3, %p1982_p2  ;;  %p2079_p8 = por %p2078_p7, %p2077_p6 }
 0x346   : > { %p2073_p5 = pneg %p2072_p4 }
 0x348   : > { %p2080_p9 = pnand %p2079_p8, %p2073_p5 }
 0x34a   : > { %2083 = shalt.err (!%p2080_p9)
}
 0x34b   : > { %s2114_s30 = smov 128   ;;  %s2115_s9 = smov 8  }
 0x34c   : > { %1973 = dma.vmem_to_hbm [thread:$0]  (%p1982_p2), %s1412_s26, 2048, %s2397_s8, [#allocation6], %s2114_s30, %s2114_s30, %s2115_s9  }
 0x34d   : > { %2103 = dma.done.wait (%p1982_p2), [#allocation6], 2048  }
 0x34e   : > { %2105 = vsyncadd (%p1982_p2), [#allocation6], 4294965248 }
 0x34f PF: > { %s20_s27 = sadd.s32 1, %s2108_s27  }
 0x350   : > { %p17_p10 = scmp.ge.s32.totalorder %s20_s27, 4  }
 0x352   :  { %19 = sbr.rel (!%p17_p10) target bundleno = 2 (0x2), region = 91 }
 0x357   :  { %1427 = vsyncpa [#allocation5], 1 }
 0x358   :  { %1429 = vsyncpa [#allocation5 + $0x1], 1 }
 0x359   :  { %1430 = vsyncpa [#allocation6], 1 }
 0x35a   :  { %1432 = vsyncpa [#allocation6 + $0x1], 1 }

</bundles_post_ra>
